<compile_context>
chip_gen: v7x
topology: tpu7x:2x2x1
jax: 0.10.0
libtpu: 0.0.40
codegen_flags: <defaults>
</compile_context>

<pallas_src>
import math

import jax
import jax.numpy as jnp
from jax.experimental import pallas as pl
from jax.experimental.pallas import tpu as pltpu


def _round_up(x, m):
    return (x + m - 1) // m * m


def _vmem_limit_bytes(est):
    """Generation-aware scoped-VMEM limit (~85% of physical, >= 32 MiB)."""
    try:
        cap = int(getattr(pltpu.get_tpu_info(), "vmem_capacity_bytes", 128 << 20))
    except Exception:  # pragma: no cover - conservative fallback
        cap = 128 << 20
    cap = int(cap * 0.85)
    return int(min(cap, max(32 << 20, 2 * est)))


# ----------------------------------------------------------------------------
# Kernel: GRU recurrence, grid = (NB batch shards [parallel], NT time blocks
# [arbitrary]).  Per grid step it consumes one (TB, Bps, 3Hp) GI block (input
# projection with r/z/in biases pre-added), carries the hidden state in an f32
# VMEM scratch, and writes one (TB, Bps, Hp) output block.
# ----------------------------------------------------------------------------
def _gru_seq_kernel(gi_ref, h0_ref, wrz_ref, wn_ref, bhn_ref, out_ref, h_ref):
    tb = pl.program_id(1)           # time-block index (inner, sequential axis)
    Hp = h_ref.shape[1]
    TB = gi_ref.shape[0]

    @pl.when(tb == 0)
    def _():
        h_ref[...] = h0_ref[...].astype(jnp.float32)

    b_hn = bhn_ref[0, :]

    # Fully unrolled time-block loop (TB is a static Python int, so indices are
    # static slices; equivalent to lax.fori_loop(..., unroll=True) but cheaper
    # addressing).
    for i in range(TB):
        gi = gi_ref[i]                       # (Bps, 3Hp) f32, biases folded in
        h = h_ref[...]                       # (Bps, Hp)  f32
        hw = h.astype(wrz_ref.dtype)

        # r/z dot first; their sigmoids (EUP) overlap the n-gate dot (MXU).
        gh_rz = jnp.dot(hw, wrz_ref[...], preferred_element_type=jnp.float32)
        r = jax.nn.sigmoid(gi[:, 0:Hp] + gh_rz[:, 0:Hp])
        z = jax.nn.sigmoid(gi[:, Hp:2 * Hp] + gh_rz[:, Hp:2 * Hp])

        gh_n = jnp.dot(hw, wn_ref[...], preferred_element_type=jnp.float32)
        n = jnp.tanh(gi[:, 2 * Hp:3 * Hp] + r * (gh_n + b_hn))

        h_new = n + z * (h - n)              # == (1 - z) * n + z * h
        h_ref[...] = h_new
        out_ref[i] = h_new.astype(out_ref.dtype)


def _run_gru_kernel(x_seq, h0_pad, prep, out_dtype, time_block=4):
    """x_seq: (Tk, Bp, I) compute dtype; h0_pad: (Bp, Hp) f32.
    Returns (Tk, Bp, Hp) outputs in out_dtype."""
    Tk, Bp, I = x_seq.shape
    Hp = prep["Hp"]
    if Tk == 0:
        return jnp.zeros((0, Bp, Hp), out_dtype)

    TB = min(time_block, Tk)
    Tp = _round_up(Tk, TB)
    NT = Tp // TB

    # Batch-shard axis: feeds the 2nd TensorCore on v7x ("parallel"); on
    # single-TC chips it is just an outer sequential loop.  Each shard must be
    # a whole number of 8-row sublane tiles.
    NB = 2 if (Bp >= 16 and Bp % 16 == 0) else 1
    Bps = Bp // NB

    # ---- Hoisted input-side projection: one big matmul over all timesteps ----
    xw = jnp.pad(x_seq, ((0, Tp - Tk), (0, 0), (0, 0)))
    gi = jnp.dot(xw.reshape(Tp * Bp, I), prep["w_i"],
                 preferred_element_type=jnp.float32)
    gi = gi.reshape(Tp, Bp, 3 * Hp) + prep["b_sum"]           # f32, biases folded

    db = jnp.dtype(prep["dtype"]).itemsize
    do = jnp.dtype(out_dtype).itemsize
    # Conservative VMEM estimate: streamed blocks double-buffered; resident
    # (constant-index) blocks also counted twice in case the pipeline
    # double-buffers them.  # TODO(synk): pin pipeline_mode=pl.Buffered(1) on
    # resident inputs once verified against the installed Pallas version.
    est = (2 * TB * Bps * 3 * Hp * 4        # GI blocks
           + 2 * TB * Bps * Hp * do         # out blocks
           + 2 * Hp * 2 * Hp * db           # W_h[r|z]
           + 2 * Hp * Hp * db               # W_h[n]
           + 2 * Bps * Hp * 4               # h0
           + 2 * Hp * 4                     # b_hn
           + Bps * Hp * 4)                  # hidden-state scratch
    vmem_limit = _vmem_limit_bytes(est)

    grid_spec = pltpu.PrefetchScalarGridSpec(
        num_scalar_prefetch=0,
        grid=(NB, NT),
        in_specs=[
            pl.BlockSpec((TB, Bps, 3 * Hp), lambda b, t: (t, b, 0)),   # GI, streamed
            pl.BlockSpec((Bps, Hp), lambda b, t: (b, 0)),              # h0 (read at t==0)
            pl.BlockSpec((Hp, 2 * Hp), lambda b, t: (0, 0)),           # W_h [r|z], resident
            pl.BlockSpec((Hp, Hp), lambda b, t: (0, 0)),               # W_h [n],   resident
            pl.BlockSpec((1, Hp), lambda b, t: (0, 0)),                # b_hn,      resident
        ],
        out_specs=pl.BlockSpec((TB, Bps, Hp), lambda b, t: (t, b, 0)),
        scratch_shapes=[pltpu.VMEM((Bps, Hp), jnp.float32)],
    )

    outs = pl.pallas_call(
        _gru_seq_kernel,
        out_shape=jax.ShapeDtypeStruct((Tp, Bp, Hp), out_dtype),
        grid_spec=grid_spec,
        compiler_params=pltpu.CompilerParams(
            dimension_semantics=("parallel", "arbitrary"),   # recurrence is serial in T
            vmem_limit_bytes=vmem_limit,
        ),
    )(gi, h0_pad, prep["w_h_rz"], prep["w_h_n"], prep["b_hn"])
    return outs[:Tk]


def prepare_params(params, dtype=jnp.float32):
    """One-time parameter prep (hoisted out of the per-call path): transpose to
    (in, out), fuse gates along the lane axis, pad hidden dim to a multiple of
    128, pre-sum paired r/z biases.  Use dtype=jnp.bfloat16 for production-size
    models (halves the resident W_h footprint; v7x also supports fp8)."""
    H, I = params["w_ir"].shape
    Hp = _round_up(H, 128)
    ph = Hp - H

    def it(w):   # input-side  (H, I) -> (I, Hp)
        return jnp.pad(w.T, ((0, 0), (0, ph)))

    def ht(w):   # hidden-side (H, H) -> (Hp, Hp)
        return jnp.pad(w.T, ((0, ph), (0, ph)))

    def pb(b):   # (H,) -> (Hp,)
        return jnp.pad(b, (0, ph))

    w_i = jnp.concatenate([it(params["w_ir"]), it(params["w_iz"]), it(params["w_in"])],
                          axis=1)                                    # (I, 3Hp)
    w_h_rz = jnp.concatenate([ht(params["w_hr"]), ht(params["w_hz"])], axis=1)  # (Hp, 2Hp)
    w_h_n = ht(params["w_hn"])                                        # (Hp, Hp)

    # Biases folded into the hoisted GI precompute (r/z use the summed pair).
    b_sum = jnp.concatenate([pb(params["b_ir"] + params["b_hr"]),
                             pb(params["b_iz"] + params["b_hz"]),
                             pb(params["b_in"])]).astype(jnp.float32)  # (3Hp,)
    # Input-only biases: first step when hx is None (spec drops hidden biases).
    b_i = jnp.concatenate([pb(params["b_ir"]), pb(params["b_iz"]),
                           pb(params["b_in"])]).astype(jnp.float32)    # (3Hp,)
    b_hn = pb(params["b_hn"]).reshape(1, Hp).astype(jnp.float32)       # (1, Hp)

    return {
        "w_i": w_i.astype(dtype),
        "w_h_rz": w_h_rz.astype(dtype),
        "w_h_n": w_h_n.astype(dtype),
        "b_sum": b_sum,
        "b_i": b_i,
        "b_hn": b_hn,
        "I": I, "H": H, "Hp": Hp,
        "dtype": dtype,
    }


def gru_section(inputs, prep, hx=None, time_block=4):
    """Pallas GRUSection forward.
    inputs: (T, B, input_size), hx: optional (B, hidden_size).
    Returns (outputs (T, B, H), h_final (B, H)), matching the PyTorch module."""
    T, B, I = inputs.shape
    assert I == prep["I"]
    H, Hp = prep["H"], prep["Hp"]
    dtype = prep["dtype"]

    # bf16 packs two rows per sublane -> pad batch to 16; f32 pads to 8.
    sub = 16 if jnp.dtype(dtype).itemsize < 4 else 8
    Bp = _round_up(max(B, 1), sub)
    out_dtype = inputs.dtype

    x_pad = jnp.pad(inputs, ((0, 0), (0, Bp - B), (0, 0))).astype(dtype)

    if hx is None:
        # First step has no hidden-side contributions (weights NOR biases) per
        # the spec's custom GRUCell.  One fused matmul in plain JAX, then the
        # Pallas kernel runs the remaining T-1 steps.
        gi0 = jnp.dot(x_pad[0], prep["w_i"],
                      preferred_element_type=jnp.float32) + prep["b_i"]
        z0 = jax.nn.sigmoid(gi0[:, Hp:2 * Hp])
        n0 = jnp.tanh(gi0[:, 2 * Hp:3 * Hp])
        h0 = (1.0 - z0) * n0                                      # (Bp, Hp) f32
        if T == 1:
            outs = h0[None].astype(out_dtype)
        else:
            rest = _run_gru_kernel(x_pad[1:], h0, prep, out_dtype, time_block)
            outs = jnp.concatenate([h0[None].astype(out_dtype), rest], axis=0)
    else:
        h0 = jnp.pad(hx.astype(jnp.float32), ((0, Bp - B), (0, Hp - H)))
        outs = _run_gru_kernel(x_pad, h0, prep, out_dtype, time_block)

    outs = outs[:, :B, :H].astype(inputs.dtype)
    return outs, outs[-1]


# ----------------------------------------------------------------------------
# Pure-JAX reference mirroring the PyTorch GRUSection forward exactly.
# ----------------------------------------------------------------------------
def gru_section_ref(inputs, p, hx=None):
    outs = []
    for t in range(inputs.shape[0]):
        x = inputs[t]
        r = x @ p["w_ir"].T + p["b_ir"]
        z = x @ p["w_iz"].T + p["b_iz"]
        n = x @ p["w_in"].T + p["b_in"]
        if hx is not None:
            r = r + hx @ p["w_hr"].T + p["b_hr"]
            z = z + hx @ p["w_hz"].T + p["b_hz"]
        r = jax.nn.sigmoid(r)
        z = jax.nn.sigmoid(z)
        if hx is not None:
            n = n + r * (hx @ p["w_hn"].T + p["b_hn"])
        n = jnp.tanh(n)
        hn = (1.0 - z) * n
        if hx is not None:
            hn = hn + z * hx
        hx = hn
        outs.append(hx)
    return jnp.stack(outs), hx


def init_params(key, input_size, hidden_size):
    k = math.sqrt(1.0 / hidden_size)
    keys = jax.random.split(key, 12)
    u = lambda kk, shape: jax.random.uniform(kk, shape, jnp.float32, minval=-k, maxval=k)
    return {
        "w_ir": u(keys[0], (hidden_size, input_size)),
        "w_hr": u(keys[1], (hidden_size, hidden_size)),
        "w_iz": u(keys[2], (hidden_size, input_size)),
        "w_hz": u(keys[3], (hidden_size, hidden_size)),
        "w_in": u(keys[4], (hidden_size, input_size)),
        "w_hn": u(keys[5], (hidden_size, hidden_size)),
        "b_ir": u(keys[6], (hidden_size,)),
        "b_hr": u(keys[7], (hidden_size,)),
        "b_iz": u(keys[8], (hidden_size,)),
        "b_hz": u(keys[9], (hidden_size,)),
        "b_in": u(keys[10], (hidden_size,)),
        "b_hn": u(keys[11], (hidden_size,)),
    }


if __name__ == "__main__":
    key = jax.random.PRNGKey(0)
    kx, kh, kp, kx2, kh2, kp2 = jax.random.split(key, 6)

    # --- Case 1 & 2: small shapes, hx given / hx None ---
    T, B, INPUT, HIDDEN = 8, 2, 16, 32
    inputs = jax.random.normal(kx, (T, B, INPUT), jnp.float32)
    hx = jax.random.normal(kh, (B, HIDDEN), jnp.float32)
    params = init_params(kp, INPUT, HIDDEN)
    prep = prepare_params(params, dtype=jnp.float32)   # bf16 for production sizes

    outs, h_fin = gru_section(inputs, prep, hx)
    outs = jax.block_until_ready(outs)
    outs_ref, h_fin_ref = gru_section_ref(inputs, params, hx)
    assert outs.shape == (T, B, HIDDEN)
    assert jnp.allclose(outs, outs_ref, atol=2e-5, rtol=2e-5), "mismatch (hx given)"
    assert jnp.allclose(h_fin, h_fin_ref, atol=2e-5, rtol=2e-5), "final-h mismatch (hx given)"

    outs0, h_fin0 = gru_section(inputs, prep, None)
    outs0 = jax.block_until_ready(outs0)
    outs0_ref, h_fin0_ref = gru_section_ref(inputs, params, None)
    assert outs0.shape == (T, B, HIDDEN)
    assert jnp.allclose(outs0, outs0_ref, atol=2e-5, rtol=2e-5), "mismatch (hx None)"
    assert jnp.allclose(h_fin0, h_fin0_ref, atol=2e-5, rtol=2e-5), "final-h mismatch (hx None)"

    # --- Case 3: larger shapes exercising the batch-shard axis (NB=2) and a
    #     time length that is not a multiple of the time block ---
    T2, B2, INPUT2, HIDDEN2 = 11, 16, 64, 128
    inputs2 = jax.random.normal(kx2, (T2, B2, INPUT2), jnp.float32)
    hx2 = jax.random.normal(kh2, (B2, HIDDEN2), jnp.float32)
    params2 = init_params(kp2, INPUT2, HIDDEN2)
    prep2 = prepare_params(params2, dtype=jnp.float32)

    outs2, h_fin2 = gru_section(inputs2, prep2, hx2)
    outs2 = jax.block_until_ready(outs2)
    outs2_ref, h_fin2_ref = gru_section_ref(inputs2, params2, hx2)
    assert outs2.shape == (T2, B2, HIDDEN2)
    assert jnp.allclose(outs2, outs2_ref, atol=1e-4, rtol=1e-4), "mismatch (large)"
    assert jnp.allclose(h_fin2, h_fin2_ref, atol=1e-4, rtol=1e-4), "final-h mismatch (large)"

    print("KERNEL_OK")
</pallas_src>

<mosaic_0001>
module attributes {stable_mosaic.version = 11 : i64} {
  func.func @_gru_seq_kernel(%arg0: i32, %arg1: i32, %arg2: memref<4x8x384xf32, #tpu.memory_space<vmem>>, %arg3: memref<8x128xf32, #tpu.memory_space<vmem>>, %arg4: memref<128x256xf32, #tpu.memory_space<vmem>>, %arg5: memref<128x128xf32, #tpu.memory_space<vmem>>, %arg6: memref<1x128xf32, #tpu.memory_space<vmem>>, %arg7: memref<4x8x128xf32, #tpu.memory_space<vmem>>, %arg8: memref<8x128xf32, #tpu.memory_space<vmem>>) attributes {dimension_semantics = [#tpu.dimension_semantics<parallel>, #tpu.dimension_semantics<arbitrary>], iteration_bounds = array<i64: 1, 2>, scalar_prefetch = 0 : i64, scratch_operands = 1 : i64, tpu.core_type = #tpu.core_type<tc>, window_params = [{transform_indices = @transform_0, window_bounds = array<i64: 4, 8, 384>}, {transform_indices = @transform_1, window_bounds = array<i64: 8, 128>}, {pipeline_mode = #tpu.pipeline_mode<synchronous>, transform_indices = @transform_2, window_bounds = array<i64: 128, 256>}, {pipeline_mode = #tpu.pipeline_mode<synchronous>, transform_indices = @transform_3, window_bounds = array<i64: 128, 128>}, {pipeline_mode = #tpu.pipeline_mode<synchronous>, transform_indices = @transform_4, window_bounds = array<i64: 1, 128>}, {transform_indices = @transform_5, window_bounds = array<i64: 4, 8, 128>}]} {
    %c0_i32 = arith.constant 0 : i32
    %0 = arith.cmpi eq, %arg1, %c0_i32 : i32
    %1 = arith.extui %0 : i1 to i32
    %c0_i32_0 = arith.constant 0 : i32
    %2 = arith.cmpi ne, %1, %c0_i32_0 : i32
    scf.if %2 {
      %c0_70 = arith.constant 0 : index
      %c0_71 = arith.constant 0 : index
      %153 = vector.load %arg3[%c0_70, %c0_71] : memref<8x128xf32, #tpu.memory_space<vmem>>, vector<8x128xf32>
      %c0_72 = arith.constant 0 : index
      %c0_73 = arith.constant 0 : index
      %154 = vector.load %arg8[%c0_72, %c0_73] : memref<8x128xf32, #tpu.memory_space<vmem>>, vector<8x128xf32>
      tpu.vector_store %arg8[%c0_72, %c0_73], %153 {strides = array<i32>} : memref<8x128xf32, #tpu.memory_space<vmem>>, vector<8x128xf32>,
    } else {
    }
    %c0 = arith.constant 0 : index
    %c0_1 = arith.constant 0 : index
    %3 = vector.load %arg6[%c0, %c0_1] : memref<1x128xf32, #tpu.memory_space<vmem>>, vector<1x128xf32>
    %4 = vector.shape_cast %3 : vector<1x128xf32> to vector<128xf32>
    %c0_2 = arith.constant 0 : index
    %c0_3 = arith.constant 0 : index
    %c0_4 = arith.constant 0 : index
    %5 = vector.load %arg2[%c0_2, %c0_3, %c0_4] : memref<4x8x384xf32, #tpu.memory_space<vmem>>, vector<1x8x384xf32>
    %6 = vector.shape_cast %5 : vector<1x8x384xf32> to vector<8x384xf32>
    %c0_5 = arith.constant 0 : index
    %c0_6 = arith.constant 0 : index
    %7 = vector.load %arg8[%c0_5, %c0_6] : memref<8x128xf32, #tpu.memory_space<vmem>>, vector<8x128xf32>
    %c0_7 = arith.constant 0 : index
    %c0_8 = arith.constant 0 : index
    %8 = vector.load %arg4[%c0_7, %c0_8] : memref<128x256xf32, #tpu.memory_space<vmem>>, vector<128x256xf32>
    %cst = arith.constant dense<0.000000e+00> : vector<8x256xf32>
    %9 = tpu.matmul %7, %8, %cst {dimension_numbers = #tpu.dot_dimension_numbers<[1], [0], [0], [1], [0, 0, 1, 1], [], []>} : vector<8x128xf32>, vector<128x256xf32>, vector<8x256xf32> -> vector<8x256xf32>
    %10 = vector.extract_strided_slice %6 {offsets = [0, 0], sizes = [8, 128], strides = [1, 1]} : vector<8x384xf32> to vector<8x128xf32>
    %11 = vector.extract_strided_slice %9 {offsets = [0, 0], sizes = [8, 128], strides = [1, 1]} : vector<8x256xf32> to vector<8x128xf32>
    %12 = arith.addf %10, %11 : vector<8x128xf32>
    %13 = arith.negf %12 : vector<8x128xf32>
    %14 = math.exp %13 : vector<8x128xf32>
    %cst_9 = arith.constant 1.000000e+00 : f32
    %15 = vector.broadcast %cst_9 : f32 to vector<8x128xf32>
    %16 = arith.addf %15, %14 : vector<8x128xf32>
    %17 = arith.divf %15, %16 : vector<8x128xf32>
    %18 = vector.extract_strided_slice %6 {offsets = [0, 128], sizes = [8, 128], strides = [1, 1]} : vector<8x384xf32> to vector<8x128xf32>
    %19 = vector.extract_strided_slice %9 {offsets = [0, 128], sizes = [8, 128], strides = [1, 1]} : vector<8x256xf32> to vector<8x128xf32>
    %20 = arith.addf %18, %19 : vector<8x128xf32>
    %21 = arith.negf %20 : vector<8x128xf32>
    %22 = math.exp %21 : vector<8x128xf32>
    %cst_10 = arith.constant 1.000000e+00 : f32
    %23 = vector.broadcast %cst_10 : f32 to vector<8x128xf32>
    %24 = arith.addf %23, %22 : vector<8x128xf32>
    %25 = arith.divf %23, %24 : vector<8x128xf32>
    %c0_11 = arith.constant 0 : index
    %c0_12 = arith.constant 0 : index
    %26 = vector.load %arg5[%c0_11, %c0_12] : memref<128x128xf32, #tpu.memory_space<vmem>>, vector<128x128xf32>
    %cst_13 = arith.constant dense<0.000000e+00> : vector<8x128xf32>
    %27 = tpu.matmul %7, %26, %cst_13 {dimension_numbers = #tpu.dot_dimension_numbers<[1], [0], [0], [1], [0, 0, 1, 1], [], []>} : vector<8x128xf32>, vector<128x128xf32>, vector<8x128xf32> -> vector<8x128xf32>
    %28 = vector.extract_strided_slice %6 {offsets = [0, 256], sizes = [8, 128], strides = [1, 1]} : vector<8x384xf32> to vector<8x128xf32>
    %29 = vector.shape_cast %4 : vector<128xf32> to vector<1x128xf32>
    %30 = vector.broadcast %29 : vector<1x128xf32> to vector<8x128xf32>
    %31 = arith.addf %27, %30 : vector<8x128xf32>
    %32 = arith.mulf %17, %31 : vector<8x128xf32>
    %33 = arith.addf %28, %32 : vector<8x128xf32>
    %34 = math.tanh %33 : vector<8x128xf32>
    %35 = arith.subf %7, %34 : vector<8x128xf32>
    %36 = arith.mulf %25, %35 : vector<8x128xf32>
    %37 = arith.addf %34, %36 : vector<8x128xf32>
    %c0_14 = arith.constant 0 : index
    %c0_15 = arith.constant 0 : index
    %38 = vector.load %arg8[%c0_14, %c0_15] : memref<8x128xf32, #tpu.memory_space<vmem>>, vector<8x128xf32>
    tpu.vector_store %arg8[%c0_14, %c0_15], %37 {strides = array<i32>} : memref<8x128xf32, #tpu.memory_space<vmem>>, vector<8x128xf32>,
    %c0_16 = arith.constant 0 : index
    %c0_17 = arith.constant 0 : index
    %c0_18 = arith.constant 0 : index
    %39 = vector.load %arg7[%c0_16, %c0_17, %c0_18] : memref<4x8x128xf32, #tpu.memory_space<vmem>>, vector<1x8x128xf32>
    %40 = vector.shape_cast %39 : vector<1x8x128xf32> to vector<8x128xf32>
    %41 = vector.shape_cast %37 : vector<8x128xf32> to vector<1x8x128xf32>
    tpu.vector_store %arg7[%c0_16, %c0_17, %c0_18], %41 {strides = array<i32>} : memref<4x8x128xf32, #tpu.memory_space<vmem>>, vector<1x8x128xf32>,
    %c1 = arith.constant 1 : index
    %c0_19 = arith.constant 0 : index
    %c0_20 = arith.constant 0 : index
    %42 = vector.load %arg2[%c1, %c0_19, %c0_20] : memref<4x8x384xf32, #tpu.memory_space<vmem>>, vector<1x8x384xf32>
    %43 = vector.shape_cast %42 : vector<1x8x384xf32> to vector<8x384xf32>
    %c0_21 = arith.constant 0 : index
    %c0_22 = arith.constant 0 : index
    %44 = vector.load %arg8[%c0_21, %c0_22] : memref<8x128xf32, #tpu.memory_space<vmem>>, vector<8x128xf32>
    %c0_23 = arith.constant 0 : index
    %c0_24 = arith.constant 0 : index
    %45 = vector.load %arg4[%c0_23, %c0_24] : memref<128x256xf32, #tpu.memory_space<vmem>>, vector<128x256xf32>
    %cst_25 = arith.constant dense<0.000000e+00> : vector<8x256xf32>
    %46 = tpu.matmul %44, %45, %cst_25 {dimension_numbers = #tpu.dot_dimension_numbers<[1], [0], [0], [1], [0, 0, 1, 1], [], []>} : vector<8x128xf32>, vector<128x256xf32>, vector<8x256xf32> -> vector<8x256xf32>
    %47 = vector.extract_strided_slice %43 {offsets = [0, 0], sizes = [8, 128], strides = [1, 1]} : vector<8x384xf32> to vector<8x128xf32>
    %48 = vector.extract_strided_slice %46 {offsets = [0, 0], sizes = [8, 128], strides = [1, 1]} : vector<8x256xf32> to vector<8x128xf32>
    %49 = arith.addf %47, %48 : vector<8x128xf32>
    %50 = arith.negf %49 : vector<8x128xf32>
    %51 = math.exp %50 : vector<8x128xf32>
    %cst_26 = arith.constant 1.000000e+00 : f32
    %52 = vector.broadcast %cst_26 : f32 to vector<8x128xf32>
    %53 = arith.addf %52, %51 : vector<8x128xf32>
    %54 = arith.divf %52, %53 : vector<8x128xf32>
    %55 = vector.extract_strided_slice %43 {offsets = [0, 128], sizes = [8, 128], strides = [1, 1]} : vector<8x384xf32> to vector<8x128xf32>
    %56 = vector.extract_strided_slice %46 {offsets = [0, 128], sizes = [8, 128], strides = [1, 1]} : vector<8x256xf32> to vector<8x128xf32>
    %57 = arith.addf %55, %56 : vector<8x128xf32>
    %58 = arith.negf %57 : vector<8x128xf32>
    %59 = math.exp %58 : vector<8x128xf32>
    %cst_27 = arith.constant 1.000000e+00 : f32
    %60 = vector.broadcast %cst_27 : f32 to vector<8x128xf32>
    %61 = arith.addf %60, %59 : vector<8x128xf32>
    %62 = arith.divf %60, %61 : vector<8x128xf32>
    %c0_28 = arith.constant 0 : index
    %c0_29 = arith.constant 0 : index
    %63 = vector.load %arg5[%c0_28, %c0_29] : memref<128x128xf32, #tpu.memory_space<vmem>>, vector<128x128xf32>
    %cst_30 = arith.constant dense<0.000000e+00> : vector<8x128xf32>
    %64 = tpu.matmul %44, %63, %cst_30 {dimension_numbers = #tpu.dot_dimension_numbers<[1], [0], [0], [1], [0, 0, 1, 1], [], []>} : vector<8x128xf32>, vector<128x128xf32>, vector<8x128xf32> -> vector<8x128xf32>
    %65 = vector.extract_strided_slice %43 {offsets = [0, 256], sizes = [8, 128], strides = [1, 1]} : vector<8x384xf32> to vector<8x128xf32>
    %66 = vector.shape_cast %4 : vector<128xf32> to vector<1x128xf32>
    %67 = vector.broadcast %66 : vector<1x128xf32> to vector<8x128xf32>
    %68 = arith.addf %64, %67 : vector<8x128xf32>
    %69 = arith.mulf %54, %68 : vector<8x128xf32>
    %70 = arith.addf %65, %69 : vector<8x128xf32>
    %71 = math.tanh %70 : vector<8x128xf32>
    %72 = arith.subf %44, %71 : vector<8x128xf32>
    %73 = arith.mulf %62, %72 : vector<8x128xf32>
    %74 = arith.addf %71, %73 : vector<8x128xf32>
    %c0_31 = arith.constant 0 : index
    %c0_32 = arith.constant 0 : index
    %75 = vector.load %arg8[%c0_31, %c0_32] : memref<8x128xf32, #tpu.memory_space<vmem>>, vector<8x128xf32>
    tpu.vector_store %arg8[%c0_31, %c0_32], %74 {strides = array<i32>} : memref<8x128xf32, #tpu.memory_space<vmem>>, vector<8x128xf32>,
    %c1_33 = arith.constant 1 : index
    %c0_34 = arith.constant 0 : index
    %c0_35 = arith.constant 0 : index
    %76 = vector.load %arg7[%c1_33, %c0_34, %c0_35] : memref<4x8x128xf32, #tpu.memory_space<vmem>>, vector<1x8x128xf32>
    %77 = vector.shape_cast %76 : vector<1x8x128xf32> to vector<8x128xf32>
    %78 = vector.shape_cast %74 : vector<8x128xf32> to vector<1x8x128xf32>
    tpu.vector_store %arg7[%c1_33, %c0_34, %c0_35], %78 {strides = array<i32>} : memref<4x8x128xf32, #tpu.memory_space<vmem>>, vector<1x8x128xf32>,
    %c2 = arith.constant 2 : index
    %c0_36 = arith.constant 0 : index
    %c0_37 = arith.constant 0 : index
    %79 = vector.load %arg2[%c2, %c0_36, %c0_37] : memref<4x8x384xf32, #tpu.memory_space<vmem>>, vector<1x8x384xf32>
    %80 = vector.shape_cast %79 : vector<1x8x384xf32> to vector<8x384xf32>
    %c0_38 = arith.constant 0 : index
    %c0_39 = arith.constant 0 : index
    %81 = vector.load %arg8[%c0_38, %c0_39] : memref<8x128xf32, #tpu.memory_space<vmem>>, vector<8x128xf32>
    %c0_40 = arith.constant 0 : index
    %c0_41 = arith.constant 0 : index
    %82 = vector.load %arg4[%c0_40, %c0_41] : memref<128x256xf32, #tpu.memory_space<vmem>>, vector<128x256xf32>
    %cst_42 = arith.constant dense<0.000000e+00> : vector<8x256xf32>
    %83 = tpu.matmul %81, %82, %cst_42 {dimension_numbers = #tpu.dot_dimension_numbers<[1], [0], [0], [1], [0, 0, 1, 1], [], []>} : vector<8x128xf32>, vector<128x256xf32>, vector<8x256xf32> -> vector<8x256xf32>
    %84 = vector.extract_strided_slice %80 {offsets = [0, 0], sizes = [8, 128], strides = [1, 1]} : vector<8x384xf32> to vector<8x128xf32>
    %85 = vector.extract_strided_slice %83 {offsets = [0, 0], sizes = [8, 128], strides = [1, 1]} : vector<8x256xf32> to vector<8x128xf32>
    %86 = arith.addf %84, %85 : vector<8x128xf32>
    %87 = arith.negf %86 : vector<8x128xf32>
    %88 = math.exp %87 : vector<8x128xf32>
    %cst_43 = arith.constant 1.000000e+00 : f32
    %89 = vector.broadcast %cst_43 : f32 to vector<8x128xf32>
    %90 = arith.addf %89, %88 : vector<8x128xf32>
    %91 = arith.divf %89, %90 : vector<8x128xf32>
    %92 = vector.extract_strided_slice %80 {offsets = [0, 128], sizes = [8, 128], strides = [1, 1]} : vector<8x384xf32> to vector<8x128xf32>
    %93 = vector.extract_strided_slice %83 {offsets = [0, 128], sizes = [8, 128], strides = [1, 1]} : vector<8x256xf32> to vector<8x128xf32>
    %94 = arith.addf %92, %93 : vector<8x128xf32>
    %95 = arith.negf %94 : vector<8x128xf32>
    %96 = math.exp %95 : vector<8x128xf32>
    %cst_44 = arith.constant 1.000000e+00 : f32
    %97 = vector.broadcast %cst_44 : f32 to vector<8x128xf32>
    %98 = arith.addf %97, %96 : vector<8x128xf32>
    %99 = arith.divf %97, %98 : vector<8x128xf32>
    %c0_45 = arith.constant 0 : index
    %c0_46 = arith.constant 0 : index
    %100 = vector.load %arg5[%c0_45, %c0_46] : memref<128x128xf32, #tpu.memory_space<vmem>>, vector<128x128xf32>
    %cst_47 = arith.constant dense<0.000000e+00> : vector<8x128xf32>
    %101 = tpu.matmul %81, %100, %cst_47 {dimension_numbers = #tpu.dot_dimension_numbers<[1], [0], [0], [1], [0, 0, 1, 1], [], []>} : vector<8x128xf32>, vector<128x128xf32>, vector<8x128xf32> -> vector<8x128xf32>
    %102 = vector.extract_strided_slice %80 {offsets = [0, 256], sizes = [8, 128], strides = [1, 1]} : vector<8x384xf32> to vector<8x128xf32>
    %103 = vector.shape_cast %4 : vector<128xf32> to vector<1x128xf32>
    %104 = vector.broadcast %103 : vector<1x128xf32> to vector<8x128xf32>
    %105 = arith.addf %101, %104 : vector<8x128xf32>
    %106 = arith.mulf %91, %105 : vector<8x128xf32>
    %107 = arith.addf %102, %106 : vector<8x128xf32>
    %108 = math.tanh %107 : vector<8x128xf32>
    %109 = arith.subf %81, %108 : vector<8x128xf32>
    %110 = arith.mulf %99, %109 : vector<8x128xf32>
    %111 = arith.addf %108, %110 : vector<8x128xf32>
    %c0_48 = arith.constant 0 : index
    %c0_49 = arith.constant 0 : index
    %112 = vector.load %arg8[%c0_48, %c0_49] : memref<8x128xf32, #tpu.memory_space<vmem>>, vector<8x128xf32>
    tpu.vector_store %arg8[%c0_48, %c0_49], %111 {strides = array<i32>} : memref<8x128xf32, #tpu.memory_space<vmem>>, vector<8x128xf32>,
    %c2_50 = arith.constant 2 : index
    %c0_51 = arith.constant 0 : index
    %c0_52 = arith.constant 0 : index
    %113 = vector.load %arg7[%c2_50, %c0_51, %c0_52] : memref<4x8x128xf32, #tpu.memory_space<vmem>>, vector<1x8x128xf32>
    %114 = vector.shape_cast %113 : vector<1x8x128xf32> to vector<8x128xf32>
    %115 = vector.shape_cast %111 : vector<8x128xf32> to vector<1x8x128xf32>
    tpu.vector_store %arg7[%c2_50, %c0_51, %c0_52], %115 {strides = array<i32>} : memref<4x8x128xf32, #tpu.memory_space<vmem>>, vector<1x8x128xf32>,
    %c3 = arith.constant 3 : index
    %c0_53 = arith.constant 0 : index
    %c0_54 = arith.constant 0 : index
    %116 = vector.load %arg2[%c3, %c0_53, %c0_54] : memref<4x8x384xf32, #tpu.memory_space<vmem>>, vector<1x8x384xf32>
    %117 = vector.shape_cast %116 : vector<1x8x384xf32> to vector<8x384xf32>
    %c0_55 = arith.constant 0 : index
    %c0_56 = arith.constant 0 : index
    %118 = vector.load %arg8[%c0_55, %c0_56] : memref<8x128xf32, #tpu.memory_space<vmem>>, vector<8x128xf32>
    %c0_57 = arith.constant 0 : index
    %c0_58 = arith.constant 0 : index
    %119 = vector.load %arg4[%c0_57, %c0_58] : memref<128x256xf32, #tpu.memory_space<vmem>>, vector<128x256xf32>
    %cst_59 = arith.constant dense<0.000000e+00> : vector<8x256xf32>
    %120 = tpu.matmul %118, %119, %cst_59 {dimension_numbers = #tpu.dot_dimension_numbers<[1], [0], [0], [1], [0, 0, 1, 1], [], []>} : vector<8x128xf32>, vector<128x256xf32>, vector<8x256xf32> -> vector<8x256xf32>
    %121 = vector.extract_strided_slice %117 {offsets = [0, 0], sizes = [8, 128], strides = [1, 1]} : vector<8x384xf32> to vector<8x128xf32>
    %122 = vector.extract_strided_slice %120 {offsets = [0, 0], sizes = [8, 128], strides = [1, 1]} : vector<8x256xf32> to vector<8x128xf32>
    %123 = arith.addf %121, %122 : vector<8x128xf32>
    %124 = arith.negf %123 : vector<8x128xf32>
    %125 = math.exp %124 : vector<8x128xf32>
    %cst_60 = arith.constant 1.000000e+00 : f32
    %126 = vector.broadcast %cst_60 : f32 to vector<8x128xf32>
    %127 = arith.addf %126, %125 : vector<8x128xf32>
    %128 = arith.divf %126, %127 : vector<8x128xf32>
    %129 = vector.extract_strided_slice %117 {offsets = [0, 128], sizes = [8, 128], strides = [1, 1]} : vector<8x384xf32> to vector<8x128xf32>
    %130 = vector.extract_strided_slice %120 {offsets = [0, 128], sizes = [8, 128], strides = [1, 1]} : vector<8x256xf32> to vector<8x128xf32>
    %131 = arith.addf %129, %130 : vector<8x128xf32>
    %132 = arith.negf %131 : vector<8x128xf32>
    %133 = math.exp %132 : vector<8x128xf32>
    %cst_61 = arith.constant 1.000000e+00 : f32
    %134 = vector.broadcast %cst_61 : f32 to vector<8x128xf32>
    %135 = arith.addf %134, %133 : vector<8x128xf32>
    %136 = arith.divf %134, %135 : vector<8x128xf32>
    %c0_62 = arith.constant 0 : index
    %c0_63 = arith.constant 0 : index
    %137 = vector.load %arg5[%c0_62, %c0_63] : memref<128x128xf32, #tpu.memory_space<vmem>>, vector<128x128xf32>
    %cst_64 = arith.constant dense<0.000000e+00> : vector<8x128xf32>
    %138 = tpu.matmul %118, %137, %cst_64 {dimension_numbers = #tpu.dot_dimension_numbers<[1], [0], [0], [1], [0, 0, 1, 1], [], []>} : vector<8x128xf32>, vector<128x128xf32>, vector<8x128xf32> -> vector<8x128xf32>
    %139 = vector.extract_strided_slice %117 {offsets = [0, 256], sizes = [8, 128], strides = [1, 1]} : vector<8x384xf32> to vector<8x128xf32>
    %140 = vector.shape_cast %4 : vector<128xf32> to vector<1x128xf32>
    %141 = vector.broadcast %140 : vector<1x128xf32> to vector<8x128xf32>
    %142 = arith.addf %138, %141 : vector<8x128xf32>
    %143 = arith.mulf %128, %142 : vector<8x128xf32>
    %144 = arith.addf %139, %143 : vector<8x128xf32>
    %145 = math.tanh %144 : vector<8x128xf32>
    %146 = arith.subf %118, %145 : vector<8x128xf32>
    %147 = arith.mulf %136, %146 : vector<8x128xf32>
    %148 = arith.addf %145, %147 : vector<8x128xf32>
    %c0_65 = arith.constant 0 : index
    %c0_66 = arith.constant 0 : index
    %149 = vector.load %arg8[%c0_65, %c0_66] : memref<8x128xf32, #tpu.memory_space<vmem>>, vector<8x128xf32>
    tpu.vector_store %arg8[%c0_65, %c0_66], %148 {strides = array<i32>} : memref<8x128xf32, #tpu.memory_space<vmem>>, vector<8x128xf32>,
    %c3_67 = arith.constant 3 : index
    %c0_68 = arith.constant 0 : index
    %c0_69 = arith.constant 0 : index
    %150 = vector.load %arg7[%c3_67, %c0_68, %c0_69] : memref<4x8x128xf32, #tpu.memory_space<vmem>>, vector<1x8x128xf32>
    %151 = vector.shape_cast %150 : vector<1x8x128xf32> to vector<8x128xf32>
    %152 = vector.shape_cast %148 : vector<8x128xf32> to vector<1x8x128xf32>
    tpu.vector_store %arg7[%c3_67, %c0_68, %c0_69], %152 {strides = array<i32>} : memref<4x8x128xf32, #tpu.memory_space<vmem>>, vector<1x8x128xf32>,
    return
  }
  func.func @transform_0(%arg0: i32, %arg1: i32) -> (i32, i32, i32) {
    %c0_i32 = arith.constant 0 : i32
    %c0_i32_0 = arith.constant 0 : i32
    return %arg1, %arg0, %c0_i32 : i32, i32, i32
  }
  func.func @transform_1(%arg0: i32, %arg1: i32) -> (i32, i32) {
    %c0_i32 = arith.constant 0 : i32
    %c0_i32_0 = arith.constant 0 : i32
    return %arg0, %c0_i32 : i32, i32
  }
  func.func @transform_2(%arg0: i32, %arg1: i32) -> (i32, i32) {
    %c0_i32 = arith.constant 0 : i32
    %c0_i32_0 = arith.constant 0 : i32
    %c0_i32_1 = arith.constant 0 : i32
    return %c0_i32, %c0_i32_0 : i32, i32
  }
  func.func @transform_3(%arg0: i32, %arg1: i32) -> (i32, i32) {
    %c0_i32 = arith.constant 0 : i32
    %c0_i32_0 = arith.constant 0 : i32
    %c0_i32_1 = arith.constant 0 : i32
    return %c0_i32, %c0_i32_0 : i32, i32
  }
  func.func @transform_4(%arg0: i32, %arg1: i32) -> (i32, i32) {
    %c0_i32 = arith.constant 0 : i32
    %c0_i32_0 = arith.constant 0 : i32
    %c0_i32_1 = arith.constant 0 : i32
    return %c0_i32, %c0_i32_0 : i32, i32
  }
  func.func @transform_5(%arg0: i32, %arg1: i32) -> (i32, i32, i32) {
    %c0_i32 = arith.constant 0 : i32
    %c0_i32_0 = arith.constant 0 : i32
    return %arg1, %arg0, %c0_i32 : i32, i32, i32
  }
}

</mosaic_0001>

<bundles_post_ra>
// kernel: tpu_custom_call.1
= control target key start
LH: loop header
LB: loop body
LE: loop exit
PB: predicated region body
PF: predicated region fallthrough
CT: control target
= control target key end

     0   :  { %s2706_s0 = inlined_call_operand.hbm [shape: f32[8,8,384], index: 0, kind: input, shape index: {}]   ;;  %s2707_s1 = inlined_call_operand.hbm [shape: f32[8,128], index: 1, kind: input, shape index: {}]   ;;  %s2708_s2 = inlined_call_operand.hbm [shape: f32[128,256], index: 2, kind: input, shape index: {}]   ;;  %s2709_s3 = inlined_call_operand.hbm [shape: f32[128,128], index: 3, kind: input, shape index: {}]   ;;  %s2710_s4 = inlined_call_operand.vmem [shape: f32[1,128], index: 4, kind: input, shape index: {}]   ;;  %s2711_s5 = inlined_call_operand.hbm [shape: f32[8,8,128], index: 5, kind: output, shape index: {}]  }
   0x1   :  { %2716 = sst [smem:[#allocation16_spill]] %s2707_s1 }
   0x2   :  { %10 = vsyncpa [#allocation4], 0 }
   0x3   :  { %12 = vsyncpa [#allocation4 + $0x1], 0 }
   0x4   :  { %13 = vsyncpa [#allocation7], 0 }
   0x5   :  { %14 = vsyncpa [#allocation10], 0 }
   0x6   :  { %15 = vsyncpa [#allocation5], 0 }
   0x7   :  { %17 = vsyncpa [#allocation5 + $0x1], 0  ;;  %s2198_s18 = smov 0   ;;  %s2200_s19 = smov 0  }
   0x8   :  { %s2202_s20 = smov 0   ;;  %s2204_s21 = smov 0  }
   0x9   :  { %s2206_s22 = smov 0   ;;  %s2208_s23 = smov 0  }
   0xa LB: > { %s1324_s24 = sadd.s32 4294967295, %s2150_s23   ;;  %s1325_s25 = sadd.s32 4294967294, %s2150_s23   ;;  %s2150_s23 = sphi %s2208_s23, %s23_s23   ;;  %s2146_s22 = sphi %s2206_s22, %s2737_s22   ;;  %s2142_s21 = sphi %s2204_s21, %s2736_s21   ;;  %s2138_s20 = sphi %s2202_s20, %s2735_s20   ;;  %s2134_s19 = sphi %s2200_s19, %s2734_s19   ;;  %s2130_s18 = sphi %s2198_s18, %s2733_s18  }
   0xb   : > { %p57_p0 = scmp.ne.s32.totalorder %s2134_s19, %s2130_s18  ;;  %p2232_p1 = scmp.eq.s32.totalorder %s1324_s24, 0 }
   0xc   : > { %p2236_p2 = scmp.eq.s32.totalorder %s1324_s24, 1  ;;  %p178_p3 = scmp.eq.s32.totalorder %s1325_s25, 1 }
   0xd   : > { %s2717_s26 = scalar_select %p2232_p1, 1, 0 }
   0xe   : > { %s2718_s27 = scalar_select %p2236_p2, 1, 0 }
   0xf   : > { %p2242_p4 = por %p2232_p1, %p57_p0  ;;  %p1326_p5 = scmp.ge.s32.totalorder %s2150_s23, 1 }
  0x10   : > { %p2247_p6 = por %p178_p3, %p57_p0  ;;  %p185_p7 = scmp.lt.s32.totalorder %s2150_s23, 3 }
  0x11   : > { %s2719_s28 = scalar_select %p2242_p4, 1, 0 }
  0x12   : > { %s2720_s29 = scalar_select %p2247_p6, 1, 0 }
  0x13   : > { %p2252_p8 = pnand %p1326_p5, %p185_p7  ;;  %s2152_s6 = smov [#allocation6]  }
  0x14   : > { %s200_s7 = sshll.u32 %s2152_s6, 4  ;;  %s2153_s8 = smov [#allocation8]   ;;  %s201_s7 = int_to_ptr.vmem [resolvable:$true] %s200_s7 }
  0x15   : > { %s2721_s30 = scalar_select %p2252_p8, 1, 0 }
  0x16   : > { %p1818_p10 = pneg %p2252_p8  ;;  %s210_s9 = sshll.u32 %s2153_s8, 4  ;;  %s2265_s9 = int_to_ptr.vmem [resolvable:$true] %s210_s9 }
  0x17   : > { %s2154_s11 = smov [#allocation9]   ;;  %s2723_s1 = sld [smem:[#allocation16_spill]] }
  0x18   : > { %p2261_p11 = pnand %p1818_p10, %p2232_p1  ;;  %s2267_s12 = sshll.u32 %s2154_s11, 4  ;;  %s224_s12 = int_to_ptr.vmem [resolvable:$true] %s2267_s12 }
  0x1a   : > { %p2277_p13 = pneg %p2261_p11 }
  0x1d   : > { %s1946_s15 = scalar_lea.hbm %s2723_s1, 128 }
  0x1e   : > { %p1947_p12 = scmp.ne.s32.totalorder %s2723_s1, %s1946_s15  ;;  %p1953_p5 = scmp.lt.u32.totalorder %s1946_s15, %s2723_s1 }
  0x20   : > { %p1949_p0 = pnand %p2277_p13, %p1947_p12 }
  0x22   : > { %p1950_p3 = pneg %p1949_p0 }
  0x24   : > { %p1955_p7 = pnand %p1953_p5, %p1950_p3 }
  0x26   : > { %1958 = shalt.err (!%p1955_p7)
}
  0x27   : > { %s1959_s8 = scalar_lea.vmem %s201_s7, 128  ;;  %p1967_p1 = scmp.lt.s32.totalorder %s201_s7, %s201_s7 }
  0x28   : > { %p1960_p10 = scmp.ne.s32.totalorder %s201_s7, %s1959_s8  ;;  %p1968_p4 = scmp.lt.s32.totalorder %s1959_s8, %s1959_s8 }
  0x2a   : > { %p1962_p9 = pnand %p1960_p10, %p2277_p13  ;;  %p1969_p8 = por %p1968_p4, %p1967_p1 }
  0x2c   : > { %p1963_p6 = pneg %p1962_p9 }
  0x2e   : > { %p1970_p2 = pnand %p1969_p8, %p1963_p6 }
  0x30   : > { %1973 = shalt.err (!%p1970_p2)
}
  0x31   : > { %1821 = dma.hbm_to_vmem [thread:$0]  (!%p2261_p11), %s2723_s1, 128, %s201_s7, [#allocation7]  }
  0x32   : > { %s1974_s16 = scalar_lea.hbm %s2708_s2, 4096 }
  0x33   : > { %p1975_p9 = scmp.ne.s32.totalorder %s2708_s2, %s1974_s16  ;;  %p1981_p2 = scmp.lt.u32.totalorder %s1974_s16, %s2708_s2 }
  0x35   : > { %p1977_p12 = pnand %p1975_p9, %p2277_p13 }
  0x37   : > { %p1978_p1 = pneg %p1977_p12 }
  0x39   : > { %p1983_p4 = pnand %p1981_p2, %p1978_p1 }
  0x3b   : > { %1986 = shalt.err (!%p1983_p4)
}
  0x3c   : > { %s1987_s7 = scalar_lea.vmem %s2265_s9, 4096  ;;  %p1995_p3 = scmp.lt.s32.totalorder %s2265_s9, %s2265_s9 }
  0x3d   : > { %p1988_p6 = scmp.ne.s32.totalorder %s2265_s9, %s1987_s7  ;;  %p1996_p5 = scmp.lt.s32.totalorder %s1987_s7, %s1987_s7 }
  0x3f   : > { %p1990_p8 = pnand %p1988_p6, %p2277_p13  ;;  %p1997_p7 = por %p1996_p5, %p1995_p3 }
  0x41   : > { %p1991_p0 = pneg %p1990_p8 }
  0x43   : > { %p1998_p10 = pnand %p1997_p7, %p1991_p0 }
  0x45   : > { %2001 = shalt.err (!%p1998_p10)
}
  0x46   : > { %s2155_s11 = smov 256   ;;  %s2156_s13 = smov 16  }
  0x47   : > { %1824 = dma.hbm_to_vmem [thread:$0]  (!%p2261_p11), %s2708_s2, 4096, %s2265_s9, [#allocation7], %s2155_s11, %s2155_s11, %s2156_s13  }
  0x48   : > { %s2002_s25 = scalar_lea.hbm %s2709_s3, 2048 }
  0x49   : > { %p2003_p9 = scmp.ne.s32.totalorder %s2709_s3, %s2002_s25  ;;  %p2009_p2 = scmp.lt.u32.totalorder %s2002_s25, %s2709_s3 }
  0x4b   : > { %p2005_p12 = pnand %p2003_p9, %p2277_p13 }
  0x4d   : > { %p2006_p1 = pneg %p2005_p12 }
  0x4f   : > { %p2011_p4 = pnand %p2009_p2, %p2006_p1 }
  0x51   : > { %2014 = shalt.err (!%p2011_p4)
}
  0x52   : > { %s2015_s14 = scalar_lea.vmem %s224_s12, 2048  ;;  %p2023_p3 = scmp.lt.s32.totalorder %s224_s12, %s224_s12 }
  0x53   : > { %p2016_p6 = scmp.ne.s32.totalorder %s224_s12, %s2015_s14  ;;  %p2024_p5 = scmp.lt.s32.totalorder %s2015_s14, %s2015_s14 }
  0x55   : > { %p2018_p8 = pnand %p2016_p6, %p2277_p13  ;;  %p2025_p7 = por %p2024_p5, %p2023_p3 }
  0x57   : > { %p2019_p0 = pneg %p2018_p8 }
  0x59   : > { %p2026_p10 = pnand %p2025_p7, %p2019_p0 }
  0x5b   : > { %2029 = shalt.err (!%p2026_p10)
}
  0x5c   : > { %s2157_s9 = smov 128   ;;  %s2158_s1 = smov 8  }
  0x5d   : > { %1827 = dma.hbm_to_vmem [thread:$0]  (!%p2261_p11), %s2709_s3, 2048, %s224_s12, [#allocation10], %s2157_s9, %s2157_s9, %s2158_s1  }
  0x5e   : > { %s44_s13 = sadd.s32 1, %s2138_s20  ;;  %s32_s15 = sadd.s32 1, %s2146_s22 }
  0x5f   : > { %p51_p13 = scmp.ne.s32.totalorder %s2138_s20, %s2134_s19  ;;  %p33_p9 = scmp.ge.s32.totalorder %s32_s15, 2 }
  0x60   : > { %p52_p12 = scmp.eq.s32.totalorder %s2150_s23, 0  ;;  %p2725_p1 = scmp.ne.s32.totalorder %s2718_s27, 0 }
  0x61   : > { %p1839_p4 = scmp.lt.s32.totalorder %s2150_s23, 2  ;;  %s2739_s15 = smov (%p33_p9, %s32_s15), 0 }
  0x62   : > { %p2342_p2 = por %p2725_p1, %p51_p13  ;;  %p53_p6 = por %p52_p12, %p51_p13 }
  0x63   : > { %s240_s10 = sand.u32 1, %s2138_s20   ;;  %s39_s17 = ssub.s32 %s2146_s22, %s2739_s15 }
  0x64   : > { %p42_p8 = scmp.eq.s32.totalorder %s39_s17, 0  ;;  %s1799_s12 = smul.u32 96, %s240_s10 }
  0x65   : > { %s1800_s25 = smul.u32 1536, %s2146_s22  ;;  %p2353_p11 = pnand %p1839_p4, %p53_p6 }
  0x66   : > { %s2358_s27 = scalar_select %p42_p8, %s2138_s20, %s44_s13  }
  0x67   : > { %s2363_s14 = scalar_lea.hbm %s2706_s0, %s1800_s25  ;;  %s244_s9 = scalar_lea.vmem [#allocation3], %s1799_s12 }
  0x68   : > { %s254_s1 = sshll.u32 %s244_s9, 4  ;;  %s2367_s24 = scalar_lea.sflag [#allocation4], %s240_s10  ;;  %s2365_s1 = int_to_ptr.vmem [resolvable:$true] %s254_s1 }
  0x69   : > { %s2030_s11 = scalar_lea.hbm %s2363_s14, 1536  ;;  %p2032_p3 = pneg %p2353_p11 }
  0x6a   : > { %p2031_p0 = scmp.ne.s32.totalorder %s2363_s14, %s2030_s11  ;;  %s2035_s25 = scalar_lea.hbm %s2706_s0, 3072 }
  0x6b   : > { %p2036_p10 = scmp.lt.u32.totalorder %s2363_s14, %s2706_s0  ;;  %p2037_p13 = scmp.lt.u32.totalorder %s2035_s25, %s2030_s11 }
  0x6c   : > { %p2033_p5 = pnand %p2032_p3, %p2031_p0  ;;  %p2039_p12 = scmp.lt.u32.totalorder %s2030_s11, %s2363_s14 }
  0x6d   : > { %p2038_p9 = por %p2037_p13, %p2036_p10 }
  0x6e   : > { %p2034_p7 = pneg %p2033_p5 }
  0x6f   : > { %p2040_p1 = por %p2039_p12, %p2038_p9 }
  0x71   : > { %p2041_p4 = pnand %p2040_p1, %p2034_p7 }
  0x73   : > { %2044 = shalt.err (!%p2041_p4)
}
  0x74   : > { %s2045_s10 = scalar_lea.vmem %s2365_s1, 1536  ;;  %s2159_s12 = smov [#allocation3]  }
  0x75   : > { %p2046_p6 = scmp.ne.s32.totalorder %s2365_s1, %s2045_s10  ;;  %s2050_s9 = sshll.u32 %s2159_s12, 4  ;;  %s2051_s9 = int_to_ptr.vmem [resolvable:$false] %s2050_s9 }
  0x76   : > { %s2052_s13 = scalar_lea.vmem %s2051_s9, 3072  ;;  %p2053_p5 = scmp.lt.s32.totalorder %s2365_s1, %s2051_s9 }
  0x77   : > { %p2048_p8 = pnand %p2046_p6, %p2032_p3  ;;  %p2054_p10 = scmp.lt.s32.totalorder %s2052_s13, %s2045_s10 }
  0x79   : > { %p2049_p0 = pneg %p2048_p8  ;;  %p2055_p13 = por %p2054_p10, %p2053_p5 }
  0x7b   : > { %p2056_p9 = pnand %p2055_p13, %p2049_p0 }
  0x7d   : > { %2059 = shalt.err (!%p2056_p9)
}
  0x7e   : > { %s2160_s11 = smov 384   ;;  %s2161_s17 = smov 24  }
  0x7f   : > { %1831 = dma.hbm_to_vmem [thread:$0]  (!%p2353_p11), %s2363_s14, 1536, %s2365_s1, %s2367_s24, %s2160_s11, %s2160_s11, %s2161_s17  }
  0x80   : > { %p2728_p3 = scmp.ne.s32.totalorder %s2721_s30, 0 }
  0x81   : > { %s2398_s25 = sand.u32 (!%p2728_p3), 1, %s2134_s19   ;;  %p2729_p7 = scmp.ne.s32.totalorder (!%p2728_p3), %s2719_s28, 0 }
  0x82   : > { %266 = sbr.rel (%p2728_p3) target bundleno = 1246 (0x4de), region = 40  ;;  %s269_s7 = scalar_lea.sflag (!%p2728_p3), [#allocation4], %s2398_s25 }
  0x83   : > { %s1801_s8 = smul.u32 (!%p2728_p3), 96, %s2398_s25 }
  0x85   : > { %s2402_s10 = scalar_lea.vmem (!%p2728_p3), [#allocation3], %s1801_s8 }
  0x89   : > { %2113 = dma.done.wait (%p2729_p7), %s269_s7, 1536  }
  0x8a   : > { %2115 = vsyncadd (%p2729_p7), %s269_s7, 4294965760  ;;  %p2730_p11 = scmp.ne.s32.totalorder %s2717_s26, 0 }
  0x8c   : > { %2117 = dma.done.wait (%p2730_p11), [#allocation7], 4224  }
  0x8d   : > { %2119 = vsyncadd (%p2730_p11), [#allocation7], 4294963072 }
  0x8e   : > { %2121 = dma.done.wait (%p2730_p11), [#allocation10], 2048  }
  0x8f   : > { %2123 = vsyncadd (%p2730_p11), [#allocation10], 4294965248  ;;  %s1338_s30 = sshll.u32 %s2398_s25, 5  ;;  %p1339_p12 = scmp.ne.s32.totalorder %s2142_s21, 0 }
  0x90   : > { %s2417_s6 = scalar_lea.vmem [#allocation11], %s1338_s30  ;;  %v317_v0 = vld [vmem:[#allocation6] sm:$0xff] (!%p1339_p12) }
  0x91   : > { %316 = sbr.rel (%p1339_p12) target bundleno = 152 (0x98), region = 60  ;;  %318 = vst [vmem:[#allocation2] sm:$0xff] (!%p1339_p12), %v317_v0 }
  0x98 PF: > { %v325_v1 = vld [vmem:[#allocation8 + $0x8] sm:$0xff]  ;;  %v327_v2 = vld [vmem:[#allocation8 + $0x18] sm:$0xff]  ;;  %v324_v3 = vld [vmem:[#allocation8] sm:$0xff]  ;;  %v2162_v8 = vmov 0.0|0.0   ;;  %v2163_v9 = vmov 0.0   ;;  %vm2164_vm0 = vmmov 0  }
  0x99   : > { %v2420_v4 = vpack.c.bf16 %v327_v2, %v325_v1  ;;  %v326_v5 = vld [vmem:[#allocation8 + $0x10] sm:$0xff]  ;;  %v329_v6 = vld [vmem:[#allocation8 + $0x28] sm:$0xff]  ;;  %v331_v7 = vld [vmem:[#allocation8 + $0x38] sm:$0xff]  ;;  %1607 = vmatprep.subr.bf16.mxu1 %v2162_v8  ;;  %420 = vmatprep.mubr.f32.mxu0 %v2163_v9  ;;  %s1366_s14 = sshll.u32 %s2142_s21, 9  ;;  %s1207_s1 = sshll.u32 %s2417_s6, 4  ;;  %s2656_s1 = int_to_ptr.vmem [resolvable:$true] %s1207_s1 }
  0x9a   : > { %v2424_v10 = vpack.c.bf16 %v326_v5, %v324_v3  ;;  %v2426_v11 = vpack.c.bf16 %v331_v7, %v329_v6  ;;  %v328_v12 = vld [vmem:[#allocation8 + $0x20] sm:$0xff]  ;;  %v330_v13 = vld [vmem:[#allocation8 + $0x30] sm:$0xff]  ;;  %v333_v14 = vld [vmem:[#allocation8 + $0x48] sm:$0xff]  ;;  %1467 = vmatprep.mubr.msk.f32.mxu1 %vm2164_vm0, %v2163_v9  ;;  %s2654_s9 = scalar_lea.hbm %s2711_s5, %s1366_s14  ;;  %s1193_s13 = scalar_lea.sflag [#allocation5], %s2398_s25 }
  0x9b   : > { %1576 = vmatprep.subr.bf16.mxu0 %v2420_v4  ;;  %v335_v15 = vld [vmem:[#allocation8 + $0x58] sm:$0xff]  ;;  %v2432_v16 = vpack.c.bf16 %v330_v13, %v328_v12  ;;  %v332_v18 = vld [vmem:[#allocation8 + $0x40] sm:$0xff]  ;;  %v334_v19 = vld [vmem:[#allocation8 + $0x50] sm:$0xff]  ;;  %s2060_s11 = scalar_lea.vmem %s2656_s1, 512  ;;  %s2165_s21 = smov [#allocation11]  }
  0x9c   : > { %1578 = vmatpush1.bf16.msra.mxu0 %v2424_v10  ;;  %v2435_v17 = vpack.c.bf16 %v335_v15, %v333_v14  ;;  %v337_v20 = vld [vmem:[#allocation8 + $0x68] sm:$0xff]  ;;  %v339_v21 = vld [vmem:[#allocation8 + $0x78] sm:$0xff]  ;;  %v2438_v22 = vpack.c.bf16 %v334_v19, %v332_v18  ;;  %v336_v23 = vld [vmem:[#allocation8 + $0x60] sm:$0xff]  ;;  %p2061_p1 = scmp.ne.s32.totalorder %s2656_s1, %s2060_s11  ;;  %s2064_s17 = sshll.u32 %s2165_s21, 4  ;;  %s2065_s17 = int_to_ptr.vmem [resolvable:$false] %s2064_s17 }
  0x9d   : > { %1580 = vmatprep.subr.bf16.mxu0 %v2426_v11  ;;  %v2441_v24 = vpack.c.bf16 %v339_v21, %v337_v20  ;;  %v338_v25 = vld [vmem:[#allocation8 + $0x70] sm:$0xff]  ;;  %v441_v26 = vld [vmem:[#allocation9] sm:$0xff]  ;;  %v442_v27 = vld [vmem:[#allocation9 + $0x8] sm:$0xff]  ;;  %s2066_s8 = scalar_lea.vmem %s2065_s17, 1024  ;;  %p2067_p8 = scmp.lt.s32.totalorder %s2656_s1, %s2065_s17 }
  0x9e   : > { %v341_v28 = vld [vmem:[#allocation8 + $0x88] sm:$0xff]  ;;  %v343_v29 = vld [vmem:[#allocation8 + $0x98] sm:$0xff]  ;;  %v2443_v30 = vpack.c.bf16 %v442_v27, %v441_v26  ;;  %v443_v31 = vld [vmem:[#allocation9 + $0x10] sm:$0xff]  ;;  %v2446_v33 = vpack.c.bf16 %v338_v25, %v336_v23  ;;  %p2062_p4 = pnand %p2061_p1, %p2342_p2  ;;  %p2068_p0 = scmp.lt.s32.totalorder %s2066_s8, %s2060_s11 }
  0x9f   : > { %v444_v32 = vld [vmem:[#allocation9 + $0x18] sm:$0xff]  ;;  %v340_v34 = vld [vmem:[#allocation8 + $0x80] sm:$0xff]  ;;  %v2452_v36 = vpack.c.bf16 %v343_v29, %v341_v28  ;;  %v342_v37 = vld [vmem:[#allocation8 + $0x90] sm:$0xff] }
  0xa0   : > { %1582 = vmatpush1.bf16.msra.mxu0 %v2432_v16  ;;  %1609 = vmatpush3.bf16.msra.mxu1 %v2443_v30  ;;  %v2449_v35 = vpack.c.bf16 %v444_v32, %v443_v31  ;;  %v445_v38 = vld [vmem:[#allocation9 + $0x20] sm:$0xff]  ;;  %v446_v39 = vld [vmem:[#allocation9 + $0x28] sm:$0xff]  ;;  %v347_v41 = vld [vmem:[#allocation8 + $0xb8] sm:$0xff]  ;;  %v2456_v42 = vpack.c.bf16 %v342_v37, %v340_v34  ;;  %p2063_p6 = pneg %p2062_p4  ;;  %p2069_p5 = por %p2068_p0, %p2067_p8 }
  0xa1   : > { %1584 = vmatprep.subr.bf16.mxu0 %v2435_v17  ;;  %1610 = vmatprep.subr.bf16.mxu1 %v2162_v8  ;;  %v345_v40 = vld [vmem:[#allocation8 + $0xa8] sm:$0xff]  ;;  %v344_v43 = vld [vmem:[#allocation8 + $0xa0] sm:$0xff]  ;;  %v2459_v44 = vpack.c.bf16 %v446_v39, %v445_v38  ;;  %v346_v46 = vld [vmem:[#allocation8 + $0xb0] sm:$0xff] }
  0xa2   : > { %v2462_v45 = vpack.c.bf16 %v347_v41, %v345_v40  ;;  %v447_v47 = vld [vmem:[#allocation9 + $0x30] sm:$0xff]  ;;  %v448_v48 = vld [vmem:[#allocation9 + $0x38] sm:$0xff]  ;;  %v349_v49 = vld [vmem:[#allocation8 + $0xc8] sm:$0xff]  ;;  %v2466_v51 = vpack.c.bf16 %v346_v46, %v344_v43  ;;  %p2070_p10 = pnand %p2069_p5, %p2063_p6 }
  0xa3   : > { %v351_v50 = vld [vmem:[#allocation8 + $0xd8] sm:$0xff]  ;;  %v348_v52 = vld [vmem:[#allocation8 + $0xc0] sm:$0xff]  ;;  %v2469_v53 = vpack.c.bf16 %v448_v48, %v447_v47  ;;  %v350_v55 = vld [vmem:[#allocation8 + $0xd0] sm:$0xff] }
  0xa4   : > { %1586 = vmatpush1.bf16.msra.mxu0 %v2438_v22  ;;  %1612 = vmatpush3.bf16.msra.mxu1 %v2449_v35  ;;  %v2472_v54 = vpack.c.bf16 %v351_v50, %v349_v49  ;;  %v449_v56 = vld [vmem:[#allocation9 + $0x40] sm:$0xff]  ;;  %v450_v57 = vld [vmem:[#allocation9 + $0x48] sm:$0xff]  ;;  %v355_v59 = vld [vmem:[#allocation8 + $0xf8] sm:$0xff]  ;;  %v2476_v60 = vpack.c.bf16 %v350_v55, %v348_v52 }
  0xa5   : > { %1588 = vmatprep.subr.bf16.mxu0 %v2441_v24  ;;  %1613 = vmatprep.subr.bf16.mxu1 %v2162_v8  ;;  %v353_v58 = vld [vmem:[#allocation8 + $0xe8] sm:$0xff]  ;;  %v352_v61 = vld [vmem:[#allocation8 + $0xe0] sm:$0xff]  ;;  %v2479_v62 = vpack.c.bf16 %v450_v57, %v449_v56  ;;  %v354_v0 = vld [vmem:[#allocation8 + $0xf0] sm:$0xff] }
  0xa6   : > { %v2482_v63 = vpack.c.bf16 %v355_v59, %v353_v58  ;;  %v451_v1 = vld [vmem:[#allocation9 + $0x50] sm:$0xff]  ;;  %v452_v2 = vld [vmem:[#allocation9 + $0x58] sm:$0xff]  ;;  %v2486_v3 = vpack.c.bf16 %v354_v0, %v352_v61  ;;  %v453_v6 = vld [vmem:[#allocation9 + $0x60] sm:$0xff] }
  0xa7   : > { %v2489_v5 = vpack.c.bf16 %v452_v2, %v451_v1  ;;  %v454_v7 = vld [vmem:[#allocation9 + $0x68] sm:$0xff]  ;;  %v2494_v12 = vld [vmem:[#allocation2] sm:$0xff]  ;;  %v456_v15 = vld [vmem:[#allocation9 + $0x78] sm:$0xff] }
  0xa8   : > { %1590 = vmatpush1.bf16.msra.mxu0 %v2446_v33  ;;  %1615 = vmatpush3.bf16.msra.mxu1 %v2459_v44  ;;  %v2497_v13 = vpack.c.bf16 %v454_v7, %v453_v6  ;;  %v455_v14 = vld [vmem:[#allocation9 + $0x70] sm:$0xff]  ;;  %v320_v19 = vld [vmem:[%s2402_s10] sm:$0xff]  ;;  %v321_v26 = vld [vmem:[%s2402_s10 + $0x8] sm:$0xff] }
  0xa9   : > { %1592 = vmatprep.subr.bf16.mxu0 %v2452_v36  ;;  %1616 = vmatprep.subr.bf16.mxu1 %v2162_v8  ;;  %v2503_v18 = vpack.c.bf16 %v456_v15, %v455_v14  ;;  %v2549_v37 = vld [vmem:[%s2710_s4] ss:$0 sm:$0xff]  ;;  %v322_v41 = vld [vmem:[%s2402_s10 + $0x10] sm:$0xff]  ;;  %v1344_v2 = vld [vmem:[%s2402_s10 + $0x20] sm:$0xff] }
  0xaa   : > { %v1343_v56 = vld [vmem:[%s2402_s10 + $0x18] sm:$0xff] }
  0xac   : > { %1594 = vmatpush1.bf16.msra.mxu0 %v2456_v42  ;;  %1618 = vmatpush3.bf16.msra.mxu1 %v2469_v53 }
  0xad   : > { %1596 = vmatprep.subr.bf16.mxu0 %v2462_v45  ;;  %1619 = vmatprep.subr.bf16.mxu1 %v2162_v8 }
  0xb0   : > { %1598 = vmatpush1.bf16.msra.mxu0 %v2466_v51  ;;  %1621 = vmatpush3.bf16.msra.mxu1 %v2479_v62 }
  0xb1   : > { %1600 = vmatprep.subr.bf16.mxu0 %v2472_v54  ;;  %1622 = vmatprep.subr.bf16.mxu1 %v2162_v8 }
  0xb4   : > { %1602 = vmatpush1.bf16.msra.mxu0 %v2476_v60  ;;  %1624 = vmatpush3.bf16.msra.mxu1 %v2489_v5 }
  0xb5   : > { %1604 = vmatprep.subr.bf16.mxu0 %v2482_v63  ;;  %1625 = vmatprep.subr.bf16.mxu1 %v2162_v8 }
  0xb8   : > { %1606 = vmatpush1.bf16.msra.mxu0 %v2486_v3  ;;  %1627 = vmatpush3.bf16.msra.mxu1 %v2497_v13 }
  0xb9   : > { %1632 = vmatprep.subr.bf16.mxu0 %v2420_v4  ;;  %1628 = vmatprep.subr.bf16.mxu1 %v2162_v8 }
  0xbb   : > { %421 = vmatmul.mubr.f32.vlgmr.msra.gmra.mrb[0].mxu0 %v2494_v12 }
  0xbc   : > { %1634 = vmatpush1.bf16.msra.mxu0 %v2424_v10  ;;  %642 = vmatprep.mubr.f32.mxu0 %v2163_v9 }
  0xbd   : > { %1636 = vmatprep.subr.bf16.mxu0 %v2426_v11  ;;  %1630 = vmatpush3.bf16.msra.mxu1 %v2503_v18 }
  0xbe   : > { %1663 = vmatprep.subr.bf16.mxu1 %v2162_v8 }
  0xc0   : > { %1638 = vmatpush1.bf16.msra.mxu0 %v2432_v16  ;;  %1468 = vmatmul.mubr.f32.vlgmr.msra.gmra.mrb[0].mxu1 %v2494_v12 }
  0xc1   : > { %1640 = vmatprep.subr.bf16.mxu0 %v2435_v17  ;;  %1665 = vmatpush3.bf16.msra.mxu1 %v2443_v30 }
  0xc2   : > { %1666 = vmatprep.subr.bf16.mxu1 %v2162_v8  ;;  %1502 = vmatprep.mubr.msk.f32.mxu1 %vm2164_vm0, %v2163_v9 }
  0xc4   : > { %1642 = vmatpush1.bf16.msra.mxu0 %v2438_v22 }
  0xc5   : > { %1644 = vmatprep.subr.bf16.mxu0 %v2441_v24  ;;  %1668 = vmatpush3.bf16.msra.mxu1 %v2449_v35 }
  0xc6   : > { %1669 = vmatprep.subr.bf16.mxu1 %v2162_v8 }
  0xc8   : > { %1646 = vmatpush1.bf16.msra.mxu0 %v2446_v33 }
  0xc9   : > { %1648 = vmatprep.subr.bf16.mxu0 %v2452_v36  ;;  %1671 = vmatpush3.bf16.msra.mxu1 %v2459_v44 }
  0xca   : > { %1672 = vmatprep.subr.bf16.mxu1 %v2162_v8 }
  0xcc   : > { %1650 = vmatpush1.bf16.msra.mxu0 %v2456_v42 }
  0xcd   : > { %1652 = vmatprep.subr.bf16.mxu0 %v2462_v45  ;;  %1674 = vmatpush3.bf16.msra.mxu1 %v2469_v53 }
  0xce   : > { %1675 = vmatprep.subr.bf16.mxu1 %v2162_v8 }
  0xd0   : > { %1654 = vmatpush1.bf16.msra.mxu0 %v2466_v51 }
  0xd1   : > { %1656 = vmatprep.subr.bf16.mxu0 %v2472_v54  ;;  %1677 = vmatpush3.bf16.msra.mxu1 %v2479_v62 }
  0xd2   : > { %1678 = vmatprep.subr.bf16.mxu1 %v2162_v8 }
  0xd4   : > { %1658 = vmatpush1.bf16.msra.mxu0 %v2476_v60 }
  0xd5   : > { %1660 = vmatprep.subr.bf16.mxu0 %v2482_v63  ;;  %1680 = vmatpush3.bf16.msra.mxu1 %v2489_v5 }
  0xd6   : > { %1681 = vmatprep.subr.bf16.mxu1 %v2162_v8 }
  0xd8   : > { %1662 = vmatpush1.bf16.msra.mxu0 %v2486_v3 }
  0xd9   : > { %1688 = vmatprep.subr.bf16.mxu0 %v2420_v4  ;;  %1683 = vmatpush3.bf16.msra.mxu1 %v2497_v13 }
  0xda   : > { %1684 = vmatprep.subr.bf16.mxu1 %v2162_v8 }
  0xdd   : > { %1686 = vmatpush3.bf16.msra.mxu1 %v2503_v18 }
  0xde   : > { %1719 = vmatprep.subr.bf16.mxu1 %v2162_v8 }
 0x18e   : > { %v422_v20 = vpop.f32.mrb[0].mxu0 }
 0x18f   : > { %v427_v21 = vadd.f32 %v422_v20, %v320_v19  ;;  %v424_v23 = vpop.f32.mrb[1].mxu0  ;;  %v1345_v20 = vld [vmem:[%s2402_s10 + $0x28] sm:$0xff] }
 0x190   : > { %v434_v28 = vadd.f32 %v424_v23, %v321_v26 }
 0x191   : > { %v1340_v25 = vmul.f32 -1.442695, %v427_v21 }
 0x192   : > { %v1341_v31 = vmul.f32 -1.442695, %v434_v28 }
 0x193   : > { %1906 = vpow2.f32 %v1340_v25  ;;  %v529_v27 = vpop.f32.mrb[0].mxu1 }
 0x194   : > { %v1469_v29 = vpop.f32.mrb[1].mxu1  ;;  %1908 = vpow2.f32 %v1341_v31  ;;  %v530_v38 = vadd.f32 %v2549_v37, %v529_v27 }
 0x19d   : > { %v1907_v32 = vpop.eup %1906 }
 0x19e   : > { %v431_v34 = vadd.f32 1.0, %v1907_v32  ;;  %v1909_v39 = vpop.eup %1908 }
 0x19f   : > { %v438_v46 = vadd.f32 1.0, %v1909_v39 }
 0x1a0   : > { %1910 = vrcp.f32 %v431_v34 }
 0x1aa   : > { %v1911_v40 = vpop.eup %1910 }
 0x1ab   : > { %v533_v43 = vmul.f32 %v1911_v40, %v530_v38 }
 0x1ad   : > { %v534_v47 = vadd.f32 %v533_v43, %v322_v41  ;;  %v1356_v43 = vld [vmem:[%s2402_s10 + $0x50] sm:$0xff] }
 0x1af   : > { %1912 = vtanh.f32 %v534_v47 }
 0x1b0   : > { %1914 = vrcp.f32 %v438_v46 }
 0x1b9   : > { %v1913_v48 = vpop.eup %1912 }
 0x1ba   : > { %v536_v49 = vsub.f32 %v2494_v12, %v1913_v48  ;;  %v1915_v50 = vpop.eup %1914 }
 0x1bc   : > { %v537_v52 = vmul.f32 %v1915_v50, %v536_v49 }
 0x1be   : > { %v2554_v55 = vadd.f32 %v1913_v48, %v537_v52 }
 0x1c0   : > { %540 = vst [vmem:[%s2417_s6] sm:$0xff] %v2554_v55  ;;  %643 = vmatmul.mubr.f32.vlgmr.msra.gmra.mrb[2].mxu0 %v2554_v55  ;;  %1503 = vmatmul.mubr.f32.vlgmr.msra.gmra.mrb[2].mxu1 %v2554_v55 }
 0x1c1   : > { %1690 = vmatpush1.bf16.msra.mxu0 %v2424_v10  ;;  %1721 = vmatpush3.bf16.msra.mxu1 %v2443_v30 }
 0x1c2   : > { %1692 = vmatprep.subr.bf16.mxu0 %v2426_v11  ;;  %1722 = vmatprep.subr.bf16.mxu1 %v2162_v8 }
 0x1c3   : > { %859 = vmatprep.mubr.f32.mxu0 %v2163_v9  ;;  %1537 = vmatprep.mubr.msk.f32.mxu1 %vm2164_vm0, %v2163_v9 }
 0x1c5   : > { %1694 = vmatpush1.bf16.msra.mxu0 %v2432_v16  ;;  %1724 = vmatpush3.bf16.msra.mxu1 %v2449_v35 }
 0x1c6   : > { %1696 = vmatprep.subr.bf16.mxu0 %v2435_v17  ;;  %1725 = vmatprep.subr.bf16.mxu1 %v2162_v8 }
 0x1c9   : > { %1698 = vmatpush1.bf16.msra.mxu0 %v2438_v22  ;;  %1727 = vmatpush3.bf16.msra.mxu1 %v2459_v44 }
 0x1ca   : > { %1700 = vmatprep.subr.bf16.mxu0 %v2441_v24  ;;  %1728 = vmatprep.subr.bf16.mxu1 %v2162_v8 }
 0x1cd   : > { %1702 = vmatpush1.bf16.msra.mxu0 %v2446_v33  ;;  %1730 = vmatpush3.bf16.msra.mxu1 %v2469_v53 }
 0x1ce   : > { %1704 = vmatprep.subr.bf16.mxu0 %v2452_v36  ;;  %1731 = vmatprep.subr.bf16.mxu1 %v2162_v8 }
 0x1d1   : > { %1706 = vmatpush1.bf16.msra.mxu0 %v2456_v42  ;;  %1733 = vmatpush3.bf16.msra.mxu1 %v2479_v62 }
 0x1d2   : > { %1708 = vmatprep.subr.bf16.mxu0 %v2462_v45  ;;  %1734 = vmatprep.subr.bf16.mxu1 %v2162_v8 }
 0x1d5   : > { %1710 = vmatpush1.bf16.msra.mxu0 %v2466_v51  ;;  %1736 = vmatpush3.bf16.msra.mxu1 %v2489_v5 }
 0x1d6   : > { %1712 = vmatprep.subr.bf16.mxu0 %v2472_v54  ;;  %1737 = vmatprep.subr.bf16.mxu1 %v2162_v8 }
 0x1d9   : > { %1714 = vmatpush1.bf16.msra.mxu0 %v2476_v60  ;;  %1739 = vmatpush3.bf16.msra.mxu1 %v2497_v13 }
 0x1da   : > { %1716 = vmatprep.subr.bf16.mxu0 %v2482_v63  ;;  %1740 = vmatprep.subr.bf16.mxu1 %v2162_v8 }
 0x1dd   : > { %1718 = vmatpush1.bf16.msra.mxu0 %v2486_v3  ;;  %1742 = vmatpush3.bf16.msra.mxu1 %v2503_v18 }
 0x1de   : > { %1744 = vmatprep.subr.bf16.mxu0 %v2420_v4  ;;  %1775 = vmatprep.subr.bf16.mxu1 %v2162_v8 }
 0x293   : > { %v644_v57 = vpop.f32.mrb[2].mxu0  ;;  %v745_v58 = vpop.f32.mrb[2].mxu1 }
 0x294   : > { %v649_v59 = vadd.f32 %v1343_v56, %v644_v57  ;;  %v646_v61 = vpop.f32.mrb[3].mxu0  ;;  %v1504_v0 = vpop.f32.mrb[3].mxu1  ;;  %v746_v15 = vadd.f32 %v2549_v37, %v745_v58  ;;  %v1357_v56 = vld [vmem:[%s2402_s10 + $0x58] sm:$0xff] }
 0x295   : > { %v656_v6 = vadd.f32 %v1344_v2, %v646_v61 }
 0x296   : > { %v1346_v1 = vmul.f32 -1.442695, %v649_v59 }
 0x297   : > { %v1347_v7 = vmul.f32 -1.442695, %v656_v6 }
 0x298   : > { %1916 = vpow2.f32 %v1346_v1 }
 0x299   : > { %1918 = vpow2.f32 %v1347_v7 }
 0x2a2   : > { %v1917_v12 = vpop.eup %1916 }
 0x2a3   : > { %v653_v14 = vadd.f32 1.0, %v1917_v12  ;;  %v1919_v4 = vpop.eup %1918 }
 0x2a4   : > { %v660_v25 = vadd.f32 1.0, %v1919_v4 }
 0x2a5   : > { %1920 = vrcp.f32 %v653_v14 }
 0x2af   : > { %v1921_v19 = vpop.eup %1920 }
 0x2b0   : > { %v749_v21 = vmul.f32 %v1921_v19, %v746_v15 }
 0x2b2   : > { %v750_v23 = vadd.f32 %v1345_v20, %v749_v21 }
 0x2b4   : > { %1922 = vtanh.f32 %v750_v23 }
 0x2b5   : > { %1924 = vrcp.f32 %v660_v25 }
 0x2be   : > { %v1923_v26 = vpop.eup %1922 }
 0x2bf   : > { %v752_v27 = vsub.f32 %v2554_v55, %v1923_v26  ;;  %v1925_v28 = vpop.eup %1924 }
 0x2c1   : > { %v753_v29 = vmul.f32 %v1925_v28, %v752_v27 }
 0x2c3   : > { %v2600_v31 = vadd.f32 %v1923_v26, %v753_v29 }
 0x2c5   : > { %1348 = vst [vmem:[%s2417_s6 + $0x8] sm:$0xff] %v2600_v31  ;;  %860 = vmatmul.mubr.f32.vlgmr.msra.gmra.mrb[4].mxu0 %v2600_v31  ;;  %1538 = vmatmul.mubr.f32.vlgmr.msra.gmra.mrb[4].mxu1 %v2600_v31 }
 0x2c6   : > { %1746 = vmatpush1.bf16.msra.mxu0 %v2424_v10  ;;  %1777 = vmatpush3.bf16.msra.mxu1 %v2443_v30  ;;  %v1350_v30 = vld [vmem:[%s2402_s10 + $0x38] sm:$0xff] }
 0x2c7   : > { %1748 = vmatprep.subr.bf16.mxu0 %v2426_v11  ;;  %1778 = vmatprep.subr.bf16.mxu1 %v2162_v8 }
 0x2c8   : > { %1076 = vmatprep.mubr.f32.mxu0 %v2163_v9  ;;  %1572 = vmatprep.mubr.msk.f32.mxu1 %vm2164_vm0, %v2163_v9  ;;  %v1349_v9 = vld [vmem:[%s2402_s10 + $0x30] sm:$0xff] }
 0x2ca   : > { %1750 = vmatpush1.bf16.msra.mxu0 %v2432_v16  ;;  %1780 = vmatpush3.bf16.msra.mxu1 %v2449_v35 }
 0x2cb   : > { %1752 = vmatprep.subr.bf16.mxu0 %v2435_v17  ;;  %1781 = vmatprep.subr.bf16.mxu1 %v2162_v8 }
 0x2ce   : > { %1754 = vmatpush1.bf16.msra.mxu0 %v2438_v22  ;;  %1783 = vmatpush3.bf16.msra.mxu1 %v2459_v44 }
 0x2cf   : > { %1756 = vmatprep.subr.bf16.mxu0 %v2441_v24  ;;  %1784 = vmatprep.subr.bf16.mxu1 %v2162_v8 }
 0x2d2   : > { %1758 = vmatpush1.bf16.msra.mxu0 %v2446_v33  ;;  %1786 = vmatpush3.bf16.msra.mxu1 %v2469_v53 }
 0x2d3   : > { %1760 = vmatprep.subr.bf16.mxu0 %v2452_v36  ;;  %1787 = vmatprep.subr.bf16.mxu1 %v2162_v8 }
 0x2d6   : > { %1762 = vmatpush1.bf16.msra.mxu0 %v2456_v42  ;;  %1789 = vmatpush3.bf16.msra.mxu1 %v2479_v62 }
 0x2d7   : > { %1764 = vmatprep.subr.bf16.mxu0 %v2462_v45  ;;  %1790 = vmatprep.subr.bf16.mxu1 %v2162_v8 }
 0x2da   : > { %1766 = vmatpush1.bf16.msra.mxu0 %v2466_v51  ;;  %1792 = vmatpush3.bf16.msra.mxu1 %v2489_v5  ;;  %v1351_v51 = vld [vmem:[%s2402_s10 + $0x40] sm:$0xff] }
 0x2db   : > { %1768 = vmatprep.subr.bf16.mxu0 %v2472_v54  ;;  %1793 = vmatprep.subr.bf16.mxu1 %v2162_v8 }
 0x2de   : > { %1770 = vmatpush1.bf16.msra.mxu0 %v2476_v60  ;;  %1795 = vmatpush3.bf16.msra.mxu1 %v2497_v13 }
 0x2df   : > { %1772 = vmatprep.subr.bf16.mxu0 %v2482_v63  ;;  %1796 = vmatprep.subr.bf16.mxu1 %v2162_v8 }
 0x2e2   : > { %1774 = vmatpush1.bf16.msra.mxu0 %v2486_v3  ;;  %1798 = vmatpush3.bf16.msra.mxu1 %v2503_v18  ;;  %v1355_v18 = vld [vmem:[%s2402_s10 + $0x48] sm:$0xff] }
 0x398   : > { %v861_v10 = vpop.f32.mrb[4].mxu0  ;;  %v962_v11 = vpop.f32.mrb[4].mxu1 }
 0x399   : > { %v866_v16 = vadd.f32 %v1349_v9, %v861_v10  ;;  %v863_v17 = vpop.f32.mrb[5].mxu0  ;;  %v1539_v22 = vpop.f32.mrb[5].mxu1  ;;  %v963_v44 = vadd.f32 %v2549_v37, %v962_v11 }
 0x39a   : > { %v873_v33 = vadd.f32 %v1350_v30, %v863_v17 }
 0x39b   : > { %v1352_v24 = vmul.f32 -1.442695, %v866_v16 }
 0x39c   : > { %v1353_v35 = vmul.f32 -1.442695, %v873_v33 }
 0x39d   : > { %1926 = vpow2.f32 %v1352_v24 }
 0x39e   : > { %1928 = vpow2.f32 %v1353_v35 }
 0x3a7   : > { %v1927_v36 = vpop.eup %1926 }
 0x3a8   : > { %v870_v42 = vadd.f32 1.0, %v1927_v36  ;;  %v1929_v8 = vpop.eup %1928 }
 0x3a9   : > { %v877_v60 = vadd.f32 1.0, %v1929_v8 }
 0x3aa   : > { %1930 = vrcp.f32 %v870_v42 }
 0x3b4   : > { %v1931_v45 = vpop.eup %1930 }
 0x3b5   : > { %v966_v53 = vmul.f32 %v1931_v45, %v963_v44 }
 0x3b7   : > { %v967_v54 = vadd.f32 %v1351_v51, %v966_v53 }
 0x3b9   : > { %1932 = vtanh.f32 %v967_v54 }
 0x3ba   : > { %1934 = vrcp.f32 %v877_v60 }
 0x3c3   : > { %v1933_v62 = vpop.eup %1932 }
 0x3c4   : > { %v969_v63 = vsub.f32 %v2600_v31, %v1933_v62  ;;  %v1935_v3 = vpop.eup %1934 }
 0x3c6   : > { %v970_v5 = vmul.f32 %v1935_v3, %v969_v63 }
 0x3c8   : > { %v971_v13 = vadd.f32 %v1933_v62, %v970_v5 }
 0x3ca   : > { %1354 = vst [vmem:[%s2417_s6 + $0x10] sm:$0xff] %v971_v13  ;;  %1077 = vmatmul.mubr.f32.vlgmr.msra.gmra.mrb[6].mxu0 %v971_v13  ;;  %1573 = vmatmul.mubr.f32.vlgmr.msra.gmra.mrb[6].mxu1 %v971_v13 }
 0x49d   : > { %v1078_v32 = vpop.f32.mrb[6].mxu0  ;;  %v1179_v34 = vpop.f32.mrb[6].mxu1 }
 0x49e   : > { %v1083_v38 = vadd.f32 %v1355_v18, %v1078_v32  ;;  %v1080_v39 = vpop.f32.mrb[7].mxu0  ;;  %v1574_v40 = vpop.f32.mrb[7].mxu1  ;;  %v1180_v52 = vadd.f32 %v2549_v37, %v1179_v34 }
 0x49f   : > { %v1090_v46 = vadd.f32 %v1356_v43, %v1080_v39 }
 0x4a0   : > { %v1358_v41 = vmul.f32 -1.442695, %v1083_v38 }
 0x4a1   : > { %v1359_v47 = vmul.f32 -1.442695, %v1090_v46 }
 0x4a2   : > { %1936 = vpow2.f32 %v1358_v41 }
 0x4a3   : > { %1938 = vpow2.f32 %v1359_v47 }
 0x4ac   : > { %v1937_v48 = vpop.eup %1936 }
 0x4ad   : > { %v1087_v49 = vadd.f32 1.0, %v1937_v48  ;;  %v1939_v50 = vpop.eup %1938 }
 0x4ae   : > { %v1094_v59 = vadd.f32 1.0, %v1939_v50 }
 0x4af   : > { %1940 = vrcp.f32 %v1087_v49 }
 0x4b9   : > { %v1941_v55 = vpop.eup %1940 }
 0x4ba   : > { %v1183_v57 = vmul.f32 %v1941_v55, %v1180_v52 }
 0x4bc   : > { %v1184_v58 = vadd.f32 %v1357_v56, %v1183_v57 }
 0x4be   : > { %1942 = vtanh.f32 %v1184_v58 }
 0x4bf   : > { %1944 = vrcp.f32 %v1094_v59 }
 0x4c8   : > { %v1943_v61 = vpop.eup %1942 }
 0x4c9   : > { %v1186_v0 = vsub.f32 %v971_v13, %v1943_v61  ;;  %v1945_v1 = vpop.eup %1944 }
 0x4cb   : > { %v1187_v2 = vmul.f32 %v1945_v1, %v1186_v0 }
 0x4cd   : > { %v1188_v37 = vadd.f32 %v1943_v61, %v1187_v2 }
 0x4cf   : > { %1189 = vst [vmem:[#allocation2] sm:$0xff] %v1188_v37  ;;  %1360 = vst [vmem:[%s2417_s6 + $0x18] sm:$0xff] %v1188_v37 }
 0x4d0   : > { %2073 = shalt.err (!%p2070_p10)
}
 0x4d1   : > { %s2074_s7 = scalar_lea.hbm %s2654_s9, 512  ;;  %s2078_s6 = scalar_lea.hbm %s2711_s5, 1024 }
 0x4d2   : > { %p2075_p13 = scmp.ne.s32.totalorder %s2654_s9, %s2074_s7  ;;  %p2079_p7 = scmp.lt.u32.totalorder %s2654_s9, %s2711_s5 }
 0x4d3   : > { %p2080_p11 = scmp.lt.u32.totalorder %s2078_s6, %s2074_s7  ;;  %p2082_p1 = scmp.lt.u32.totalorder %s2074_s7, %s2654_s9 }
 0x4d4   : > { %p2076_p9 = pnand %p2075_p13, %p2342_p2 }
 0x4d5   : > { %p2081_p12 = por %p2080_p11, %p2079_p7 }
 0x4d6   : > { %p2077_p3 = pneg %p2076_p9 }
 0x4d7   : > { %p2083_p4 = por %p2082_p1, %p2081_p12 }
 0x4d9   : > { %p2084_p6 = pnand %p2083_p4, %p2077_p3 }
 0x4db   : > { %2087 = shalt.err (!%p2084_p6)
}
 0x4dc   : > { %s2166_s14 = smov 128   ;;  %s2167_s24 = smov 8  }
 0x4dd   : > { %1816 = dma.vmem_to_hbm [thread:$0]  (%p2342_p2), %s2656_s1, 512, %s2654_s9, %s1193_s13, %s2166_s14, %s2166_s14, %s2167_s24  }
 0x4de PF: > { %s1222_s12 = sand.u32 1, %s2130_s18   ;;  %p2731_p8 = scmp.ne.s32.totalorder %s2720_s29, 0 }
 0x4df   : > { %p2732_p0 = scmp.ge.s32.totalorder %s2150_s23, 2  ;;  %s1223_s11 = scalar_lea.sflag [#allocation5], %s1222_s12 }
 0x4e1   : > { %p1833_p5 = pnand %p2732_p0, %p2731_p8 }
 0x4e3   : > { %2125 = dma.done.wait (!%p1833_p5), %s1223_s11, 512  }
 0x4e4   : > { %2127 = vsyncadd (!%p1833_p5), %s1223_s11, 4294966784  ;;  %s23_s23 = sadd.s32 1, %s2150_s23   ;;  %s2733_s18 = smov %s2134_s19 }
 0x4e5   : > { %p20_p10 = scmp.ge.s32.totalorder %s23_s23, 4   ;;  %s2734_s19 = smov %s2138_s20 }
 0x4e6   : > { %s2735_s20 = smov %s2358_s27  ;;  %s2736_s21 = smov %s2146_s22 }
 0x4e7   : > { %s2737_s22 = smov %s2739_s15  ;;  %22 = sbr.rel (!%p20_p10) target bundleno = 10 (0xa), region = 108 }
 0x4ee   :  { %1228 = vsyncpa [#allocation4], 1 }
 0x4ef   :  { %1230 = vsyncpa [#allocation4 + $0x1], 1 }
 0x4f0   :  { %1231 = vsyncpa [#allocation7], 1 }
 0x4f1   :  { %1232 = vsyncpa [#allocation10], 1 }
 0x4f2   :  { %1233 = vsyncpa [#allocation5], 1 }
 0x4f3   :  { %1235 = vsyncpa [#allocation5 + $0x1], 1 }

</bundles_post_ra>
